<compile_context>
chip_gen: v5e
topology: v5e:2x2
jax: 0.10.0
libtpu: 0.0.40
codegen_flags: <defaults>
</compile_context>

<pallas_src>
import jax
import jax.numpy as jnp
from jax.experimental import pallas as pl
from jax.experimental.pallas import tpu as pltpu

C_DIM = 256                   # input channel dim (fixed by the module)
ATT_DIM = 256                 # attention dim (W is 256x256, V is 256x1)
SCALE = ATT_DIM ** (-0.5)
BB_MAX = 32                   # max batch elements packed per grid step
VMEM_BUDGET = 24 * 1024 * 1024  # headroom under the 32 MiB scoped VMEM limit


def _attention_kernel(x_ref, w_ref, v_ref, o_ref):
    # x_ref: (BB, C, T)   w_ref: (C, ATT_DIM)   v_ref: (1, ATT_DIM)   o_ref: (BB, C)
    bb, c, t = x_ref.shape
    x = x_ref[...]                                    # (BB, C, T) f32

    # NCT -> NTC inside VMEM (XLU work, no extra HBM round trip).
    xt = jnp.transpose(x, (0, 2, 1))                  # (BB, T, C), lane-dense C=256
    x2 = xt.reshape(bb * t, c)                        # (BB*T, C)

    # Scores: single large MXU matmul (M = BB*T rows) + tanh (EUP).
    h = jnp.tanh(jnp.dot(x2, w_ref[...],
                         preferred_element_type=jnp.float32))        # (BB*T, ATT_DIM)

    # V contraction on VPU + lane reduction (an N=1 MXU matmul would waste the MXU).
    e = jnp.sum(h * v_ref[...], axis=-1, keepdims=True) * SCALE      # (BB*T, 1)

    # Plain exp-softmax over T, per batch element (matches the PyTorch module).
    n1 = jnp.exp(e).reshape(bb, t, 1)                 # (BB, T, 1)
    n2 = jnp.sum(n1, axis=1, keepdims=True)           # (BB, 1, 1)

    # Deferred normalization: unnormalized weighted sum over T, then scale rows.
    acc = jnp.sum(xt * n1, axis=1)                    # (BB, C)
    o_ref[...] = acc * (1.0 / n2[:, 0, :])            # (BB, C), lane-dense store


def _pick_block(B, T):
    """Pick (bb, n_blocks) so the per-step VMEM footprint stays within budget."""
    t_lanes = max(128, pl.cdiv(T, 128) * 128)          # lane-padded minor dim of (C, T)
    per_elem = 2 * C_DIM * t_lanes * 4                 # x block, double-buffered
    per_elem += 3 * max(T, 8) * C_DIM * 4              # xt / x2 / h intermediates (f32)
    bb_cap = max(1, min(BB_MAX, VMEM_BUDGET // per_elem))
    n_blocks = max(1, pl.cdiv(B, bb_cap))
    if n_blocks == 1:
        return B, 1                                    # block == full array dims
    bb = pl.cdiv(pl.cdiv(B, n_blocks), 8) * 8          # sublane-aligned batch block
    return bb, n_blocks


@jax.jit
def attention_forward(x_nct, W, V):
    """x_nct: (B, 256, T) float32; returns (B, 256) float32."""
    B, C, T = x_nct.shape
    assert C == C_DIM and W.shape == (C_DIM, ATT_DIM) and V.shape == (ATT_DIM, 1)

    x = x_nct.astype(jnp.float32)
    w = W.astype(jnp.float32)
    v_row = V.reshape(1, ATT_DIM).astype(jnp.float32)   # lane-dense V

    bb, n_blocks = _pick_block(B, T)
    Bp = n_blocks * bb
    if Bp != B:
        # Zero-padded batches give finite (uniform-alpha, all-zero) outputs; sliced off below.
        x = jnp.pad(x, ((0, Bp - B), (0, 0), (0, 0)))

    cost = pl.CostEstimate(
        flops=2 * Bp * T * C * ATT_DIM + 4 * Bp * T * ATT_DIM + 3 * Bp * T * C,
        transcendentals=Bp * T * (ATT_DIM + 1),          # tanh over (B*T, 256) + exp
        bytes_accessed=(Bp * C * T + C * ATT_DIM + ATT_DIM + Bp * C) * 4,
    )

    out = pl.pallas_call(
        _attention_kernel,
        out_shape=jax.ShapeDtypeStruct((Bp, C), jnp.float32),
        grid=(n_blocks,),
        in_specs=[
            pl.BlockSpec((bb, C, T), lambda i: (i, 0, 0)),        # x (NCT, read once from HBM)
            pl.BlockSpec((C, ATT_DIM), lambda i: (0, 0)),         # W (resident across steps)
            pl.BlockSpec((1, ATT_DIM), lambda i: (0, 0)),         # V as a lane-dense row
        ],
        out_specs=pl.BlockSpec((bb, C), lambda i: (i, 0)),
        compiler_params=pltpu.CompilerParams(
            dimension_semantics=("parallel",),
            vmem_limit_bytes=32 * 1024 * 1024,                    # fits v5e/v6e/v7x
        ),
        cost_estimate=cost,
    )(x, w, v_row)
    return out[:B]


def attention_reference(x_nct, W, V):
    """Pure-JAX reference mirroring the PyTorch forward exactly."""
    x = jnp.transpose(x_nct, (0, 2, 1))                 # (B, T, C)
    e = jnp.matmul(x, W)                                # (B, T, ATT_DIM)
    e = jnp.matmul(jnp.tanh(e), V)                      # (B, T, 1)
    e = e * SCALE
    n1 = jnp.exp(e)
    n2 = jnp.sum(jnp.exp(e), axis=1, keepdims=True)
    alpha = n1 / n2
    return jnp.sum(alpha * x, axis=1)                   # (B, C)


if __name__ == "__main__":
    key = jax.random.PRNGKey(0)
    kx, kw, kv = jax.random.split(key, 3)

    B, C, T = 2, 256, 8                                  # C fixed at 256 by the module
    x = jax.random.normal(kx, (B, C, T), dtype=jnp.float32)
    W = jax.random.normal(kw, (256, ATT_DIM), dtype=jnp.float32)
    V = jax.random.normal(kv, (ATT_DIM, 1), dtype=jnp.float32)

    out = jax.block_until_ready(attention_forward(x, W, V))
    ref = attention_reference(x, W, V)

    assert out.shape == (B, C)
    assert jnp.allclose(out, ref, atol=1e-4, rtol=1e-4), (
        f"max abs err {jnp.max(jnp.abs(out - ref))}")

    print("KERNEL_OK")
</pallas_src>

<mosaic_0001>
module attributes {stable_mosaic.version = 11 : i64} {
  func.func @_attention_kernel(%arg0: i32, %arg1: memref<2x256x8xf32, #tpu.memory_space<vmem>>, %arg2: memref<256x256xf32, #tpu.memory_space<vmem>>, %arg3: memref<1x256xf32, #tpu.memory_space<vmem>>, %arg4: memref<2x256xf32, #tpu.memory_space<vmem>>) attributes {dimension_semantics = [#tpu.dimension_semantics<parallel>], iteration_bounds = array<i64: 1>, scalar_prefetch = 0 : i64, scratch_operands = 0 : i64, tpu.core_type = #tpu.core_type<tc>, window_params = [{transform_indices = @transform_0, window_bounds = array<i64: 2, 256, 8>}, {pipeline_mode = #tpu.pipeline_mode<synchronous>, transform_indices = @transform_1, window_bounds = array<i64: 256, 256>}, {pipeline_mode = #tpu.pipeline_mode<synchronous>, transform_indices = @transform_2, window_bounds = array<i64: 1, 256>}, {transform_indices = @transform_3, window_bounds = array<i64: 2, 256>}]} {
    %c0 = arith.constant 0 : index
    %c0_0 = arith.constant 0 : index
    %c0_1 = arith.constant 0 : index
    %0 = vector.load %arg1[%c0, %c0_0, %c0_1] : memref<2x256x8xf32, #tpu.memory_space<vmem>>, vector<2x256x8xf32>
    %1 = tpu.transpose %0, [0, 2, 1] : vector<2x256x8xf32> -> vector<2x8x256xf32>
    %2 = vector.shape_cast %1 : vector<2x8x256xf32> to vector<16x256xf32>
    %c0_2 = arith.constant 0 : index
    %c0_3 = arith.constant 0 : index
    %3 = vector.load %arg2[%c0_2, %c0_3] : memref<256x256xf32, #tpu.memory_space<vmem>>, vector<256x256xf32>
    %cst = arith.constant dense<0.000000e+00> : vector<16x256xf32>
    %4 = tpu.matmul %2, %3, %cst {dimension_numbers = #tpu.dot_dimension_numbers<[1], [0], [0], [1], [0, 0, 1, 1], [], []>} : vector<16x256xf32>, vector<256x256xf32>, vector<16x256xf32> -> vector<16x256xf32>
    %5 = math.tanh %4 : vector<16x256xf32>
    %c0_4 = arith.constant 0 : index
    %c0_5 = arith.constant 0 : index
    %6 = vector.load %arg3[%c0_4, %c0_5] : memref<1x256xf32, #tpu.memory_space<vmem>>, vector<1x256xf32>
    %7 = vector.broadcast %6 : vector<1x256xf32> to vector<16x256xf32>
    %8 = arith.mulf %5, %7 : vector<16x256xf32>
    %cst_6 = arith.constant dense<0.000000e+00> : vector<16xf32>
    %9 = vector.multi_reduction <add>, %8, %cst_6 [1] : vector<16x256xf32> to vector<16xf32>
    %10 = vector.shape_cast %9 : vector<16xf32> to vector<16x1xf32>
    %cst_7 = arith.constant 6.250000e-02 : f32
    %11 = vector.broadcast %cst_7 : f32 to vector<16x1xf32>
    %12 = arith.mulf %10, %11 : vector<16x1xf32>
    %13 = math.exp %12 : vector<16x1xf32>
    %14 = vector.shape_cast %13 : vector<16x1xf32> to vector<2x8x1xf32>
    %cst_8 = arith.constant dense<0.000000e+00> : vector<2x1xf32>
    %15 = vector.multi_reduction <add>, %14, %cst_8 [1] : vector<2x8x1xf32> to vector<2x1xf32>
    %16 = vector.shape_cast %15 : vector<2x1xf32> to vector<2x1x1xf32>
    %17 = vector.broadcast %14 : vector<2x8x1xf32> to vector<2x8x256xf32>
    %18 = arith.mulf %1, %17 : vector<2x8x256xf32>
    %cst_9 = arith.constant dense<0.000000e+00> : vector<2x256xf32>
    %19 = vector.multi_reduction <add>, %18, %cst_9 [1] : vector<2x8x256xf32> to vector<2x256xf32>
    %20 = vector.shape_cast %16 : vector<2x1x1xf32> to vector<2x1xf32>
    %cst_10 = arith.constant 1.000000e+00 : f32
    %21 = vector.broadcast %cst_10 : f32 to vector<2x1xf32>
    %22 = arith.divf %21, %20 : vector<2x1xf32>
    %23 = vector.broadcast %22 : vector<2x1xf32> to vector<2x256xf32>
    %24 = arith.mulf %19, %23 : vector<2x256xf32>
    %c0_11 = arith.constant 0 : index
    %c0_12 = arith.constant 0 : index
    %25 = vector.load %arg4[%c0_11, %c0_12] : memref<2x256xf32, #tpu.memory_space<vmem>>, vector<2x256xf32>
    tpu.vector_store %arg4[%c0_11, %c0_12], %24 {strides = array<i32>} : memref<2x256xf32, #tpu.memory_space<vmem>>, vector<2x256xf32>,
    return
  }
  func.func @transform_0(%arg0: i32) -> (i32, i32, i32) {
    %c0_i32 = arith.constant 0 : i32
    %c0_i32_0 = arith.constant 0 : i32
    %c0_i32_1 = arith.constant 0 : i32
    return %arg0, %c0_i32, %c0_i32_0 : i32, i32, i32
  }
  func.func @transform_1(%arg0: i32) -> (i32, i32) {
    %c0_i32 = arith.constant 0 : i32
    %c0_i32_0 = arith.constant 0 : i32
    %c0_i32_1 = arith.constant 0 : i32
    return %c0_i32, %c0_i32_0 : i32, i32
  }
  func.func @transform_2(%arg0: i32) -> (i32, i32) {
    %c0_i32 = arith.constant 0 : i32
    %c0_i32_0 = arith.constant 0 : i32
    %c0_i32_1 = arith.constant 0 : i32
    return %c0_i32, %c0_i32_0 : i32, i32
  }
  func.func @transform_3(%arg0: i32) -> (i32, i32) {
    %c0_i32 = arith.constant 0 : i32
    %c0_i32_0 = arith.constant 0 : i32
    return %arg0, %c0_i32 : i32, i32
  }
}

</mosaic_0001>

<bundles_post_ra>
// kernel: attention_forward.1
= control target key start
LH: loop header
LB: loop body
LE: loop exit
PB: predicated region body
PF: predicated region fallthrough
CT: control target
= control target key end

     0   :  { %s978_s0 = inlined_call_operand.vmem [shape: f32[2,256,8], index: 0, kind: input, shape index: {}]   ;;  %s979_s1 = inlined_call_operand.vmem [shape: f32[256,256], index: 1, kind: input, shape index: {}]   ;;  %s980_s2 = inlined_call_operand.vmem [shape: f32[1,256], index: 2, kind: input, shape index: {}]   ;;  %s981_s3 = inlined_call_operand.hbm [shape: f32[2,256], index: 3, kind: output, shape index: {}]  }
   0x1   :  { %v31_v0 = vld [vmem:[%s978_s0 + $0x80] sm:$0xff] }
   0x2   :  { %v15_v1 = vld [vmem:[%s978_s0] sm:$0xff]  ;;  %111 = vxpose.xlu1.b32.start [1/16] (narrow) %v31_v0, 8 }
   0x3   :  { %79 = vxpose.xlu0.b32.start [1/16] (narrow) %v15_v1, 8 }
   0x4   :  { %8 = vsyncpa [#allocation3], 0  ;;  %v32_v2 = vld [vmem:[%s978_s0 + $0x88] sm:$0xff]  ;;  %v33_v4 = vld [vmem:[%s978_s0 + $0x90] sm:$0xff]  ;;  %vm469_vm8 = vcmask 1041408   ;;  %vm477_vm9 = vcmask 1041409  }
   0x5   :  { %v16_v3 = vld [vmem:[%s978_s0 + $0x8] sm:$0xff]  ;;  %v17_v5 = vld [vmem:[%s978_s0 + $0x10] sm:$0xff]  ;;  %v34_v6 = vld [vmem:[%s978_s0 + $0x98] sm:$0xff]  ;;  %vm479_vm10 = vcmask 1043459   ;;  %vm481_vm11 = vcmask 1045509   ;;  %s494_s27 = sshll.u32 %s981_s3, 4  ;;  %s495_s27 = int_to_ptr.hbm [resolvable:$true] %s494_s27 }
   0x6   :  { %v18_v7 = vld [vmem:[%s978_s0 + $0x18] sm:$0xff]  ;;  %v35_v8 = vld [vmem:[%s978_s0 + $0xa0] sm:$0xff]  ;;  %v36_v10 = vld [vmem:[%s978_s0 + $0xa8] sm:$0xff]  ;;  %vm483_vm12 = vcmask 1047559  }
   0x7   :  { %v19_v9 = vld [vmem:[%s978_s0 + $0x20] sm:$0xff]  ;;  %v20_v11 = vld [vmem:[%s978_s0 + $0x28] sm:$0xff]  ;;  %v37_v13 = vld [vmem:[%s978_s0 + $0xb0] sm:$0xff] }
   0x8   :  { %v47_v12 = vld [vmem:[%s978_s0 + $0x100] sm:$0xff]  ;;  %v21_v14 = vld [vmem:[%s978_s0 + $0x30] sm:$0xff]  ;;  %v48_v15 = vld [vmem:[%s978_s0 + $0x108] sm:$0xff] }
   0x9   :  { %143 = vxpose.xlu2.b32.start [1/16] (narrow) %v47_v12, 8  ;;  %v38_v16 = vld [vmem:[%s978_s0 + $0xb8] sm:$0xff]  ;;  %v49_v18 = vld [vmem:[%s978_s0 + $0x110] sm:$0xff]  ;;  %v39_v19 = vld [vmem:[%s978_s0 + $0xc0] sm:$0xff] }
   0xa   :  { %112 = vxpose.xlu1.b32.cont [2/16] (narrow) %v32_v2, 8  ;;  %v22_v17 = vld [vmem:[%s978_s0 + $0x38] sm:$0xff]  ;;  %v23_v20 = vld [vmem:[%s978_s0 + $0x40] sm:$0xff]  ;;  %v40_v22 = vld [vmem:[%s978_s0 + $0xc8] sm:$0xff] }
   0xb   :  { %80 = vxpose.xlu0.b32.cont [2/16] (narrow) %v16_v3, 8  ;;  %v50_v21 = vld [vmem:[%s978_s0 + $0x118] sm:$0xff]  ;;  %v24_v23 = vld [vmem:[%s978_s0 + $0x48] sm:$0xff]  ;;  %v51_v24 = vld [vmem:[%s978_s0 + $0x120] sm:$0xff] }
   0xc   :  { %v41_v25 = vld [vmem:[%s978_s0 + $0xd0] sm:$0xff]  ;;  %v52_v27 = vld [vmem:[%s978_s0 + $0x128] sm:$0xff]  ;;  %v42_v28 = vld [vmem:[%s978_s0 + $0xd8] sm:$0xff] }
   0xd   :  { %v25_v26 = vld [vmem:[%s978_s0 + $0x50] sm:$0xff]  ;;  %v26_v29 = vld [vmem:[%s978_s0 + $0x58] sm:$0xff]  ;;  %v43_v31 = vld [vmem:[%s978_s0 + $0xe0] sm:$0xff] }
   0xe   :  { %v53_v30 = vld [vmem:[%s978_s0 + $0x130] sm:$0xff]  ;;  %v27_v32 = vld [vmem:[%s978_s0 + $0x60] sm:$0xff]  ;;  %v54_v33 = vld [vmem:[%s978_s0 + $0x138] sm:$0xff] }
   0xf   :  { %v238_v34 = vld [vmem:[%s979_s1 + $0xf8] sm:$0xff]  ;;  %v236_v36 = vld [vmem:[%s979_s1 + $0xe8] sm:$0xff]  ;;  %v237_v42 = vld [vmem:[%s979_s1 + $0xf0] sm:$0xff] }
  0x10   :  { %v270_v35 = vld [vmem:[%s979_s1 + $0x1f8] sm:$0xff]  ;;  %317 = vmatpush.msra.mxu2 %v238_v34  ;;  %v268_v37 = vld [vmem:[%s979_s1 + $0x1e8] sm:$0xff]  ;;  %v269_v43 = vld [vmem:[%s979_s1 + $0x1f0] sm:$0xff]  ;;  %271 = vmatpush.msra.mxu0 %v237_v42 }
  0x11   :  { %144 = vxpose.xlu2.b32.cont [2/16] (narrow) %v48_v15, 8  ;;  %340 = vmatpush.msra.mxu3 %v270_v35  ;;  %v44_v38 = vld [vmem:[%s978_s0 + $0xe8] sm:$0xff]  ;;  %v234_v40 = vld [vmem:[%s979_s1 + $0xd8] sm:$0xff]  ;;  %v55_v46 = vld [vmem:[%s978_s0 + $0x140] sm:$0xff] }
  0x12   :  { %113 = vxpose.xlu1.b32.cont [3/16] (narrow) %v33_v4, 8  ;;  %318 = vmatpush.msra.mxu2 %v236_v36  ;;  %v28_v39 = vld [vmem:[%s978_s0 + $0x68] sm:$0xff]  ;;  %v266_v41 = vld [vmem:[%s979_s1 + $0x1d8] sm:$0xff]  ;;  %v235_v47 = vld [vmem:[%s979_s1 + $0xe0] sm:$0xff] }
  0x13   :  { %81 = vxpose.xlu0.b32.cont [3/16] (narrow) %v17_v5, 8  ;;  %341 = vmatpush.msra.mxu3 %v268_v37  ;;  %v232_v44 = vld [vmem:[%s979_s1 + $0xc8] sm:$0xff]  ;;  %v267_v48 = vld [vmem:[%s979_s1 + $0x1e0] sm:$0xff]  ;;  %v230_v49 = vld [vmem:[%s979_s1 + $0xb8] sm:$0xff] }
  0x14   :  { %319 = vmatpush.msra.mxu2 %v234_v40  ;;  %v264_v45 = vld [vmem:[%s979_s1 + $0x1c8] sm:$0xff]  ;;  %294 = vmatpush.msra.mxu1 %v269_v43  ;;  %v262_v50 = vld [vmem:[%s979_s1 + $0x1b8] sm:$0xff]  ;;  %v233_v51 = vld [vmem:[%s979_s1 + $0xd0] sm:$0xff] }
  0x15   :  { %342 = vmatpush.msra.mxu3 %v266_v41  ;;  %272 = vmatpush.msra.mxu0 %v235_v47  ;;  %v265_v52 = vld [vmem:[%s979_s1 + $0x1d0] sm:$0xff]  ;;  %v228_v53 = vld [vmem:[%s979_s1 + $0xa8] sm:$0xff]  ;;  %v231_v57 = vld [vmem:[%s979_s1 + $0xc0] sm:$0xff] }
  0x16   :  { %320 = vmatpush.msra.mxu2 %v232_v44  ;;  %v45_v54 = vld [vmem:[%s978_s0 + $0xf0] sm:$0xff]  ;;  %295 = vmatpush.msra.mxu1 %v267_v48  ;;  %v260_v56 = vld [vmem:[%s979_s1 + $0x1a8] sm:$0xff]  ;;  %v263_v58 = vld [vmem:[%s979_s1 + $0x1c0] sm:$0xff] }
  0x17   :  { %343 = vmatpush.msra.mxu3 %v264_v45  ;;  %v29_v55 = vld [vmem:[%s978_s0 + $0x70] sm:$0xff]  ;;  %273 = vmatpush.msra.mxu0 %v233_v51  ;;  %v226_v59 = vld [vmem:[%s979_s1 + $0x98] sm:$0xff]  ;;  %v224_v63 = vld [vmem:[%s979_s1 + $0x88] sm:$0xff] }
  0x18   :  { %321 = vmatpush.msra.mxu2 %v230_v49  ;;  %296 = vmatpush.msra.mxu1 %v265_v52  ;;  %v258_v60 = vld [vmem:[%s979_s1 + $0x198] sm:$0xff]  ;;  %v229_v61 = vld [vmem:[%s979_s1 + $0xb0] sm:$0xff]  ;;  %v256_v0 = vld [vmem:[%s979_s1 + $0x188] sm:$0xff] }
  0x19   :  { %145 = vxpose.xlu2.b32.cont [3/16] (narrow) %v49_v18, 8  ;;  %344 = vmatpush.msra.mxu3 %v262_v50  ;;  %v261_v62 = vld [vmem:[%s979_s1 + $0x1b0] sm:$0xff]  ;;  %v56_v1 = vld [vmem:[%s978_s0 + $0x148] sm:$0xff]  ;;  %v227_v2 = vld [vmem:[%s979_s1 + $0xa0] sm:$0xff] }
  0x1a   :  { %114 = vxpose.xlu1.b32.cont [4/16] (narrow) %v34_v6, 8  ;;  %322 = vmatpush.msra.mxu2 %v228_v53  ;;  %v259_v3 = vld [vmem:[%s979_s1 + $0x1a0] sm:$0xff]  ;;  %v222_v4 = vld [vmem:[%s979_s1 + $0x78] sm:$0xff]  ;;  %v216_v18 = vld [vmem:[%s979_s1 + $0x48] sm:$0xff] }
  0x1b   :  { %82 = vxpose.xlu0.b32.cont [4/16] (narrow) %v18_v7, 8  ;;  %345 = vmatpush.msra.mxu3 %v260_v56  ;;  %v254_v5 = vld [vmem:[%s979_s1 + $0x178] sm:$0xff]  ;;  %v223_v12 = vld [vmem:[%s979_s1 + $0x80] sm:$0xff]  ;;  %v213_v34 = vld [vmem:[%s979_s1 + $0x30] sm:$0xff] }
  0x1c   :  { %274 = vmatpush.msra.mxu0 %v231_v57  ;;  %297 = vmatpush.msra.mxu1 %v263_v58  ;;  %v46_v6 = vld [vmem:[%s978_s0 + $0xf8] sm:$0xff]  ;;  %v245_v35 = vld [vmem:[%s979_s1 + $0x130] sm:$0xff]  ;;  %v208_v36 = vld [vmem:[%s979_s1 + $0x8] sm:$0xff] }
  0x1d   :  { %323 = vmatpush.msra.mxu2 %v226_v59  ;;  %346 = vmatpush.msra.mxu3 %v258_v60  ;;  %v30_v7 = vld [vmem:[%s978_s0 + $0x78] sm:$0xff]  ;;  %v240_v37 = vld [vmem:[%s979_s1 + $0x108] sm:$0xff]  ;;  %v211_v40 = vld [vmem:[%s979_s1 + $0x20] sm:$0xff] }
  0x1e   :  { %275 = vmatpush.msra.mxu0 %v229_v61  ;;  %298 = vmatpush.msra.mxu1 %v261_v62  ;;  %v250_v15 = vld [vmem:[%s979_s1 + $0x158] sm:$0xff]  ;;  %v243_v41 = vld [vmem:[%s979_s1 + $0x120] sm:$0xff]  ;;  %v209_v42 = vld [vmem:[%s979_s1 + $0x10] sm:$0xff] }
  0x1f   :  { %324 = vmatpush.msra.mxu2 %v224_v63  ;;  %347 = vmatpush.msra.mxu3 %v256_v0  ;;  %v241_v43 = vld [vmem:[%s979_s1 + $0x110] sm:$0xff]  ;;  %v207_v44 = vld [vmem:[%s979_s1] sm:$0xff]  ;;  %v66_v48 = vld [vmem:[%s978_s0 + $0x198] sm:$0xff] }
  0x20   :  { %276 = vmatpush.msra.mxu0 %v227_v2  ;;  %299 = vmatpush.msra.mxu1 %v259_v3  ;;  %v239_v45 = vld [vmem:[%s979_s1 + $0x100] sm:$0xff]  ;;  %v60_v49 = vld [vmem:[%s978_s0 + $0x168] sm:$0xff]  ;;  %v61_v51 = vld [vmem:[%s978_s0 + $0x170] sm:$0xff] }
  0x21   :  { %146 = vxpose.xlu2.b32.cont [4/16] (narrow) %v50_v21, 8  ;;  %325 = vmatpush.msra.mxu2 %v222_v4  ;;  %v219_v21 = vld [vmem:[%s979_s1 + $0x60] sm:$0xff]  ;;  %v69_v56 = vld [vmem:[%s978_s0 + $0x1b0] sm:$0xff]  ;;  %v70_v57 = vld [vmem:[%s978_s0 + $0x1b8] sm:$0xff] }
  0x22   :  { %115 = vxpose.xlu1.b32.cont [5/16] (narrow) %v35_v8, 8  ;;  %v225_v8 = vld [vmem:[%s979_s1 + $0x90] sm:$0xff]  ;;  %348 = vmatpush.msra.mxu3 %v254_v5  ;;  %v59_v47 = vld [vmem:[%s978_s0 + $0x160] sm:$0xff]  ;;  %v72_v59 = vld [vmem:[%s978_s0 + $0x1c8] sm:$0xff] }
  0x23   :  { %83 = vxpose.xlu0.b32.cont [5/16] (narrow) %v19_v9, 8  ;;  %v257_v9 = vld [vmem:[%s979_s1 + $0x190] sm:$0xff]  ;;  %277 = vmatpush.msra.mxu0 %v225_v8  ;;  %v67_v50 = vld [vmem:[%s978_s0 + $0x1a0] sm:$0xff]  ;;  %v74_v61 = vld [vmem:[%s978_s0 + $0x1d8] sm:$0xff] }
  0x24   :  { %300 = vmatpush.msra.mxu1 %v257_v9  ;;  %v71_v58 = vld [vmem:[%s978_s0 + $0x1c0] sm:$0xff]  ;;  %v73_v60 = vld [vmem:[%s978_s0 + $0x1d0] sm:$0xff]  ;;  %v76_v0 = vld [vmem:[%s978_s0 + $0x1e8] sm:$0xff] }
  0x25   :  { %278 = vmatpush.msra.mxu0 %v223_v12  ;;  %v75_v63 = vld [vmem:[%s978_s0 + $0x1e0] sm:$0xff]  ;;  %v78_v2 = vld [vmem:[%s978_s0 + $0x1f8] sm:$0xff] }
  0x29   :  { %147 = vxpose.xlu2.b32.cont [5/16] (narrow) %v51_v24, 8  ;;  %v214_v24 = vld [vmem:[%s979_s1 + $0x38] sm:$0xff] }
  0x2a   :  { %116 = vxpose.xlu1.b32.cont [6/16] (narrow) %v36_v10, 8  ;;  %v220_v10 = vld [vmem:[%s979_s1 + $0x68] sm:$0xff] }
  0x2b   :  { %84 = vxpose.xlu0.b32.cont [6/16] (narrow) %v20_v11, 8  ;;  %v252_v11 = vld [vmem:[%s979_s1 + $0x168] sm:$0xff]  ;;  %326 = vmatpush.msra.mxu2 %v220_v10  ;;  %v367_v10 = vld [vmem:[%s980_s2] sm:$0x3] }
  0x2c   :  { %349 = vmatpush.msra.mxu3 %v252_v11  ;;  %v369_v11 = vperm.slane %v367_v10, 0 }
  0x2e   :  { %350 = vmatpush.msra.mxu3 %v250_v15 }
  0x31   :  { %148 = vxpose.xlu2.b32.cont [6/16] (narrow) %v52_v27, 8  ;;  %v249_v27 = vld [vmem:[%s979_s1 + $0x150] sm:$0xff] }
  0x32   :  { %117 = vxpose.xlu1.b32.cont [7/16] (narrow) %v37_v13, 8  ;;  %v255_v13 = vld [vmem:[%s979_s1 + $0x180] sm:$0xff] }
  0x33   :  { %85 = vxpose.xlu0.b32.cont [7/16] (narrow) %v21_v14, 8  ;;  %v218_v14 = vld [vmem:[%s979_s1 + $0x58] sm:$0xff]  ;;  %301 = vmatpush.msra.mxu1 %v255_v13  ;;  %v370_v13 = vperm.slane %v367_v10, 1 }
  0x34   :  { %327 = vmatpush.msra.mxu2 %v218_v14 }
  0x36   :  { %328 = vmatpush.msra.mxu2 %v216_v18 }
  0x38   :  { %329 = vmatpush.msra.mxu2 %v214_v24 }
  0x39   :  { %149 = vxpose.xlu2.b32.cont [7/16] (narrow) %v53_v30, 8  ;;  %v215_v30 = vld [vmem:[%s979_s1 + $0x40] sm:$0xff] }
  0x3a   :  { %118 = vxpose.xlu1.b32.cont [8/16] (narrow) %v38_v16, 8  ;;  %v221_v16 = vld [vmem:[%s979_s1 + $0x70] sm:$0xff] }
  0x3b   :  { %86 = vxpose.xlu0.b32.cont [8/16] (narrow) %v22_v17, 8  ;;  %v253_v17 = vld [vmem:[%s979_s1 + $0x170] sm:$0xff]  ;;  %279 = vmatpush.msra.mxu0 %v221_v16 }
  0x3c   :  { %302 = vmatpush.msra.mxu1 %v253_v17 }
  0x3d   :  { %280 = vmatpush.msra.mxu0 %v219_v21 }
  0x41   :  { %150 = vxpose.xlu2.b32.cont [8/16] (narrow) %v54_v33, 8  ;;  %v242_v33 = vld [vmem:[%s979_s1 + $0x118] sm:$0xff] }
  0x42   :  { %119 = vxpose.xlu1.b32.cont [9/16] (narrow) %v39_v19, 8  ;;  %v248_v19 = vld [vmem:[%s979_s1 + $0x148] sm:$0xff] }
  0x43   :  { %87 = vxpose.xlu0.b32.cont [9/16] (narrow) %v23_v20, 8  ;;  %v57_v20 = vld [vmem:[%s978_s0 + $0x150] sm:$0xff]  ;;  %351 = vmatpush.msra.mxu3 %v248_v19 }
  0x49   :  { %151 = vxpose.xlu2.b32.cont [9/16] (narrow) %v55_v46, 8  ;;  %v65_v46 = vld [vmem:[%s978_s0 + $0x190] sm:$0xff] }
  0x4a   :  { %120 = vxpose.xlu1.b32.cont [10/16] (narrow) %v40_v22, 8  ;;  %v63_v22 = vld [vmem:[%s978_s0 + $0x180] sm:$0xff] }
  0x4b   :  { %88 = vxpose.xlu0.b32.cont [10/16] (narrow) %v24_v23, 8  ;;  %v251_v23 = vld [vmem:[%s979_s1 + $0x160] sm:$0xff] }
  0x4c   :  { %303 = vmatpush.msra.mxu1 %v251_v23 }
  0x4e   :  { %304 = vmatpush.msra.mxu1 %v249_v27 }
  0x51   :  { %152 = vxpose.xlu2.b32.cont [10/16] (narrow) %v56_v1, 8  ;;  %v77_v1 = vld [vmem:[%s978_s0 + $0x1f0] sm:$0xff] }
  0x52   :  { %121 = vxpose.xlu1.b32.cont [11/16] (narrow) %v41_v25, 8  ;;  %v246_v25 = vld [vmem:[%s979_s1 + $0x138] sm:$0xff] }
  0x53   :  { %89 = vxpose.xlu0.b32.cont [11/16] (narrow) %v25_v26, 8  ;;  %v217_v26 = vld [vmem:[%s979_s1 + $0x50] sm:$0xff]  ;;  %352 = vmatpush.msra.mxu3 %v246_v25 }
  0x54   :  { %281 = vmatpush.msra.mxu0 %v217_v26 }
  0x56   :  { %282 = vmatpush.msra.mxu0 %v215_v30 }
  0x58   :  { %283 = vmatpush.msra.mxu0 %v213_v34 }
  0x59   :  { %153 = vxpose.xlu2.b32.cont [11/16] (narrow) %v57_v20, 8 }
  0x5a   :  { %122 = vxpose.xlu1.b32.cont [12/16] (narrow) %v42_v28, 8  ;;  %v212_v28 = vld [vmem:[%s979_s1 + $0x28] sm:$0xff]  ;;  %284 = vmatpush.msra.mxu0 %v211_v40 }
  0x5b   :  { %90 = vxpose.xlu0.b32.cont [12/16] (narrow) %v26_v29, 8  ;;  %v244_v29 = vld [vmem:[%s979_s1 + $0x128] sm:$0xff]  ;;  %330 = vmatpush.msra.mxu2 %v212_v28 }
  0x5c   :  { %353 = vmatpush.msra.mxu3 %v244_v29  ;;  %285 = vmatpush.msra.mxu0 %v209_v42 }
  0x5e   :  { %354 = vmatpush.msra.mxu3 %v242_v33  ;;  %286 = vmatpush.msra.mxu0 %v207_v44 }
  0x60   :  { %355 = vmatpush.msra.mxu3 %v240_v37 }
  0x62   :  { %123 = vxpose.xlu1.b32.cont [13/16] (narrow) %v43_v31, 8  ;;  %v247_v31 = vld [vmem:[%s979_s1 + $0x140] sm:$0xff] }
  0x63   :  { %91 = vxpose.xlu0.b32.cont [13/16] (narrow) %v27_v32, 8  ;;  %v210_v32 = vld [vmem:[%s979_s1 + $0x18] sm:$0xff]  ;;  %305 = vmatpush.msra.mxu1 %v247_v31 }
  0x64   :  { %331 = vmatpush.msra.mxu2 %v210_v32 }
  0x65   :  { %306 = vmatpush.msra.mxu1 %v245_v35 }
  0x66   :  { %332 = vmatpush.msra.mxu2 %v208_v36 }
  0x67   :  { %307 = vmatpush.msra.mxu1 %v243_v41 }
  0x69   :  { %308 = vmatpush.msra.mxu1 %v241_v43 }
  0x6a   :  { %124 = vxpose.xlu1.b32.cont [14/16] (narrow) %v44_v38, 8  ;;  %v64_v38 = vld [vmem:[%s978_s0 + $0x188] sm:$0xff] }
  0x6b   :  { %92 = vxpose.xlu0.b32.cont [14/16] (narrow) %v28_v39, 8  ;;  %v58_v39 = vld [vmem:[%s978_s0 + $0x158] sm:$0xff]  ;;  %309 = vmatpush.msra.mxu1 %v239_v45 }
  0x6c   :  { %154 = vxpose.xlu2.b32.cont [12/16] (narrow) %v58_v39, 8 }
  0x72   :  { %125 = vxpose.xlu1.b32.cont [15/16] (narrow) %v45_v54, 8  ;;  %v68_v54 = vld [vmem:[%s978_s0 + $0x1a8] sm:$0xff] }
  0x73   :  { %93 = vxpose.xlu0.b32.cont [15/16] (narrow) %v29_v55, 8  ;;  %v62_v55 = vld [vmem:[%s978_s0 + $0x178] sm:$0xff]  ;;  %s546_s0 = smov [#allocation2]  }
  0x74   :  { %155 = vxpose.xlu2.b32.cont [13/16] (narrow) %v59_v47, 8  ;;  %s492_s2 = sshll.u32 %s546_s0, 4  ;;  %s493_s2 = int_to_ptr.vmem [resolvable:$true] %s492_s2 }
  0x7a   :  { %126 = vxpose.xlu1.b32.end [16/16] (narrow) %v46_v6, 8 }
  0x7b   :  { %94 = vxpose.xlu0.b32.end [16/16] (narrow) %v30_v7, 8 }
  0x7c   :  { %156 = vxpose.xlu2.b32.cont [14/16] (narrow) %v60_v49, 8 }
  0x83   :  { %175 = vxpose.xlu0.b32.start [1/16] (narrow) %v63_v22, 8 }
  0x84   :  { %157 = vxpose.xlu2.b32.cont [15/16] (narrow) %v61_v51, 8 }
  0x8b   :  { %176 = vxpose.xlu0.b32.cont [2/16] (narrow) %v64_v38, 8 }
  0x8c   :  { %158 = vxpose.xlu2.b32.end [16/16] (narrow) %v62_v55, 8 }
  0x93   :  { %177 = vxpose.xlu0.b32.cont [3/16] (narrow) %v65_v46, 8 }
  0x9b   :  { %178 = vxpose.xlu0.b32.cont [4/16] (narrow) %v66_v48, 8 }
  0xa3   :  { %179 = vxpose.xlu0.b32.cont [5/16] (narrow) %v67_v50, 8 }
  0xa6   :  { %v915_v52 = vpop.trf.xlu1 }
  0xa7   :  { %v917_v53 = vpop.trf.xlu0  ;;  %356 = vmatmul.f32.vlgmr.msra.gmra.mxu3 %v915_v52  ;;  %310 = vmatmul.f32.vlgmr.msra.gmra.mxu1 %v915_v52 }
  0xa8   :  { %333 = vmatmul.f32.vlgmr.msra.gmra.mxu2 %v917_v53  ;;  %287 = vmatmul.f32.vlgmr.msra.gmra.mxu0 %v917_v53 }
  0xab   :  { %180 = vxpose.xlu0.b32.cont [6/16] (narrow) %v68_v54, 8 }
  0xad   :  { %v947_v62 = vpop.trf.xlu2 }
  0xb0   :  { %290 = vmatmul.f32.gmra.mxu0 %v947_v62  ;;  %336 = vmatmul.f32.gmra.mxu2 %v947_v62 }
  0xb3   :  { %181 = vxpose.xlu0.b32.cont [7/16] (narrow) %v69_v56, 8 }
  0xbb   :  { %182 = vxpose.xlu0.b32.cont [8/16] (narrow) %v70_v57, 8 }
  0xc3   :  { %183 = vxpose.xlu0.b32.cont [9/16] (narrow) %v71_v58, 8 }
  0xcb   :  { %184 = vxpose.xlu0.b32.cont [10/16] (narrow) %v72_v59, 8 }
  0xd3   :  { %185 = vxpose.xlu0.b32.cont [11/16] (narrow) %v73_v60, 8 }
  0xdb   :  { %186 = vxpose.xlu0.b32.cont [12/16] (narrow) %v74_v61, 8 }
  0xe3   :  { %187 = vxpose.xlu0.b32.cont [13/16] (narrow) %v75_v63, 8 }
  0xeb   :  { %188 = vxpose.xlu0.b32.cont [14/16] (narrow) %v76_v0, 8 }
  0xf3   :  { %189 = vxpose.xlu0.b32.cont [15/16] (narrow) %v77_v1, 8 }
  0xfb   :  { %190 = vxpose.xlu0.b32.end [16/16] (narrow) %v78_v2, 8 }
 0x124   :  { %v311_v4 = vpop.f32.mrf.mxu1 }
 0x125   :  { %v288_v3 = vpop.f32.mrf.mxu0 }
 0x126   :  { %v312_v6 = vadd.f32 %v311_v4, %v288_v3 }
 0x127   :  { %v191_v5 = vpop.trf.xlu0 }
 0x128   :  { %313 = vmatmul.f32.gmra.mxu1 %v191_v5  ;;  %359 = vmatmul.f32.gmra.mxu3 %v191_v5  ;;  %504 = vtanh.f32 %v312_v6 }
 0x12a   :  { %v357_v8 = vpop.f32.mrf.mxu3 }
 0x12b   :  { %v334_v7 = vpop.f32.mrf.mxu2 }
 0x12c   :  { %v358_v9 = vadd.f32 %v357_v8, %v334_v7 }
 0x12d   :  { %v291_v18 = vpop.f32.mrf.mxu0 }
 0x12e   :  { %506 = vtanh.f32 %v358_v9  ;;  %v505_v12 = vpop.eup %504 }
 0x12f   :  { %v373_v14 = vmul.f32 %v505_v12, %v369_v11 }
 0x133   :  { %v337_v21 = vpop.f32.mrf.mxu2 }
 0x134   :  { %v507_v15 = vpop.eup %506 }
 0x135   :  { %v374_v16 = vmul.f32 %v507_v15, %v370_v13 }
 0x137   :  { %v377_v17 = vadd.f32 %v374_v16, %v373_v14 }
 0x139   :  { %378 = vadd.xlane.f32.xlu2 %v377_v17 }
 0x1a5   :  { %v314_v19 = vpop.f32.mrf.mxu1 }
 0x1a6   :  { %v315_v20 = vadd.f32 %v314_v19, %v291_v18 }
 0x1a8   :  { %508 = vtanh.f32 %v315_v20 }
 0x1ab   :  { %v360_v22 = vpop.f32.mrf.mxu3 }
 0x1ac   :  { %v361_v23 = vadd.f32 %v360_v22, %v337_v21  ;;  %v379_v29 = vpop.xlane.xlu2 %378 }
 0x1ad   :  { %v383_v30 = vmul.f32 0.0625, %v379_v29 }
 0x1ae   :  { %510 = vtanh.f32 %v361_v23  ;;  %v509_v24 = vpop.eup %508 }
 0x1af   :  { %v375_v26 = vmul.f32 %v509_v24, %v369_v11  ;;  %v385_v31 = vmul.f32 1.442695, %v383_v30 }
 0x1b1   :  { %512 = vpow2.f32 %v385_v31 }
 0x1b4   :  { %v511_v25 = vpop.eup %510 }
 0x1b5   :  { %v376_v27 = vmul.f32 %v511_v25, %v370_v13 }
 0x1b7   :  { %v380_v28 = vadd.f32 %v376_v27, %v375_v26  ;;  %v513_v32 = vpop.eup %512 }
 0x1b8   :  { %v389_v33 = vrot.slane %v513_v32, 4  ;;  %v402_v44 = vmul.f32 %v513_v32, %v915_v52  ;;  %v401_v55 = vmul.f32 %v513_v32, %v917_v53 }
 0x1b9   :  { %381 = vadd.xlane.f32.xlu1 %v380_v28 }
 0x1ba   :  { %v390_v34 = vadd.f32 %v513_v32, %v389_v33  ;;  %v411_v49 = vrot.slane %v402_v44, 4  ;;  %v405_v63 = vrot.slane %v401_v55, 4 }
 0x1bc   :  { %v391_v35 = vrot.slane %v390_v34, 2  ;;  %v412_v58 = vadd.f32 %v411_v49, %v402_v44  ;;  %v406_v3 = vadd.f32 %v405_v63, %v401_v55 }
 0x1be   :  { %v392_v36 = vadd.f32 %v391_v35, %v390_v34  ;;  %v413_v52 = vrot.slane %v412_v58, 2  ;;  %v407_v9 = vrot.slane %v406_v3, 2 }
 0x1c0   :  { %v393_v37 = vrot.slane %v392_v36, 1  ;;  %v408_v18 = vadd.f32 %v407_v9, %v406_v3 }
 0x1c2   :  { %v394_v41 = vadd.f32 %v393_v37, %v392_v36  ;;  %v409_v27 = vrot.slane %v408_v18, 1 }
 0x1c4   :  { %vm434_vm0 = vweird.f32 %v394_v41  ;;  %v438_v7 = vand.u32 2147483647, %v394_v41  ;;  %v410_v35 = vadd.f32 %v409_v27, %v408_v18 }
 0x1c6   :  { %vm439_vm3 = vcmp.eq.f32.partialorder %v438_v7, 8.507059e+37 }
 0x22c   :  { %v382_v38 = vpop.xlane.xlu1 %381 }
 0x22d   :  { %v384_v39 = vmul.f32 0.0625, %v382_v38 }
 0x22f   :  { %v387_v40 = vmul.f32 1.442695, %v384_v39 }
 0x231   :  { %514 = vpow2.f32 %v387_v40 }
 0x232   :  { %516 = vrcp.f32 %v394_v41 }
 0x237   :  { %v515_v42 = vpop.eup %514 }
 0x238   :  { %v395_v43 = vrot.slane %v515_v42, 4  ;;  %v517_v45 = vpop.eup %516  ;;  %v404_v47 = vmul.f32 %v515_v42, %v191_v5  ;;  %v403_v50 = vmul.f32 %v515_v42, %v947_v62  ;;  %v414_v62 = vadd.f32 %v413_v52, %v412_v58 }
 0x239   :  { %v430_v51 = vmul.f32 %v517_v45, %v394_v41  ;;  %vm435_vm1 = vweird.f32 %v517_v45  ;;  %v440_v5 = vand.u32 2147483648, %v394_v41 }
 0x23a   :  { %v396_v46 = vadd.f32 %v515_v42, %v395_v43  ;;  %v423_v56 = vrot.slane %v404_v47, 4  ;;  %v417_v59 = vrot.slane %v403_v50, 4  ;;  %vm969_vm2 = vmor %vm434_vm0, %vm435_vm1  ;;  %v415_v13 = vrot.slane %v414_v62, 1 }
 0x23b   :  { %v431_v60 = vsub.f32 1.0, %v430_v51  ;;  %v441_v14 = vor.u32 1.1754944e-38, %v440_v5 }
 0x23c   :  { %v397_v48 = vrot.slane %v396_v46, 2  ;;  %v424_v0 = vadd.f32 %v423_v56, %v404_v47  ;;  %v418_v1 = vadd.f32 %v417_v59, %v403_v50  ;;  %v416_v24 = vadd.f32 %v415_v13, %v414_v62 }
 0x23d   :  { %v432_v2 = vmul.f32 %v517_v45, %v431_v60 }
 0x23e   :  { %v398_v54 = vadd.f32 %v397_v48, %v396_v46  ;;  %v425_v4 = vrot.slane %v424_v0, 2  ;;  %v419_v6 = vrot.slane %v418_v1, 2 }
 0x23f   :  { %v433_v53 = vadd.f32 %v517_v45, %v432_v2 }
 0x240   :  { %v399_v57 = vrot.slane %v398_v54, 1  ;;  %v426_v11 = vadd.f32 %v425_v4, %v424_v0  ;;  %v420_v15 = vadd.f32 %v419_v6, %v418_v1 }
 0x241   :  { %v437_v16 = vsel %vm969_vm2, %v517_v45, %v433_v53 }
 0x242   :  { %v400_v61 = vadd.f32 %v399_v57, %v398_v54  ;;  %v427_v20 = vrot.slane %v426_v11, 1  ;;  %v442_v23 = vsel %vm439_vm3, %v441_v14, %v437_v16  ;;  %v421_v25 = vrot.slane %v420_v15, 1 }
 0x243   :  { %v460_v31 = vmul.f32 %v442_v23, %v416_v24  ;;  %v459_v39 = vmul.f32 %v442_v23, %v410_v35 }
 0x244   :  { %518 = vrcp.f32 %v400_v61  ;;  %v455_v19 = vand.u32 2147483648, %v400_v61  ;;  %v453_v22 = vand.u32 2147483647, %v400_v61  ;;  %vm449_vm5 = vweird.f32 %v400_v61 }
 0x245   :  { %v428_v29 = vadd.f32 %v427_v20, %v426_v11  ;;  %v422_v33 = vadd.f32 %v421_v25, %v420_v15  ;;  %v467_v37 = vrot.slane %v460_v31, 6 }
 0x246   :  { %v456_v28 = vor.u32 1.1754944e-38, %v455_v19  ;;  %vm454_vm7 = vcmp.eq.f32.partialorder %v453_v22, 8.507059e+37 }
 0x247   :  { %v470_v42 = vsel %vm469_vm8, %v459_v39, %v467_v37 }
 0x24a   :  { %v519_v8 = vpop.eup %518 }
 0x24b   :  { %v445_v12 = vmul.f32 %v519_v8, %v400_v61  ;;  %vm450_vm4 = vweird.f32 %v519_v8 }
 0x24c   :  { %vm451_vm6 = vmor %vm449_vm5, %vm450_vm4 }
 0x24d   :  { %v446_v17 = vsub.f32 1.0, %v445_v12 }
 0x24f   :  { %v447_v21 = vmul.f32 %v519_v8, %v446_v17 }
 0x251   :  { %v448_v26 = vadd.f32 %v519_v8, %v447_v21 }
 0x253   :  { %v452_v30 = vsel %vm451_vm6, %v519_v8, %v448_v26 }
 0x254   :  { %v457_v32 = vsel %vm454_vm7, %v456_v28, %v452_v30 }
 0x255   :  { %v462_v34 = vmul.f32 %v457_v32, %v428_v29  ;;  %v461_v36 = vmul.f32 %v457_v32, %v422_v33 }
 0x257   :  { %v468_v38 = vrot.slane %v462_v34, 6 }
 0x259   :  { %v471_v40 = vsel %vm469_vm8, %v461_v36, %v468_v38 }
 0x25a   :  { %v476_v41 = vrot.slane %v471_v40, 7 }
 0x25c   :  { %v478_v43 = vsel %vm477_vm9, %v476_v41, %v470_v42 }
 0x25d   :  { %v480_v44 = vsel %vm479_vm10, %v476_v41, %v478_v43 }
 0x25e   :  { %v482_v45 = vsel %vm481_vm11, %v476_v41, %v480_v44 }
 0x25f   :  { %v484_v46 = vsel %vm483_vm12, %v476_v41, %v482_v45 }
 0x260   :  { %486 = vst [vmem:[#allocation2] sm:$0xf] %v484_v46 }
 0x261   :  { %497 = dma.vmem_to_hbm [thread:$0]  %s493_s2, 64, %s495_s27, [#allocation3]  }
 0x262   :  { %544 = dma.done.wait [#allocation3], 64  }
 0x263   :  { %545 = vsyncadd [#allocation3], 4294967232 }
 0x264   :  { %502 = vsyncpa [#allocation3], 1 }

</bundles_post_ra>
